<compile_context>
chip_gen: v7x
topology: tpu7x:2x2x1
jax: 0.10.0
libtpu: 0.0.40
codegen_flags: <defaults>
</compile_context>

<pallas_src>
import jax
import jax.numpy as jnp
from jax.experimental import pallas as pl
from jax.experimental.pallas import tpu as pltpu


def _round_up(x, m):
    return (x + m - 1) // m * m


def _pick_row_tile(rows_padded, max_tile=512):
    """Largest multiple of 8 <= max_tile that divides rows_padded."""
    best = 8
    t = 8
    while t <= min(max_tile, rows_padded):
        if rows_padded % t == 0:
            best = t
        t += 8
    return best


def _pick_col_tile(d_model, max_tile=512):
    """Lane-dense column tile: full d_model if small, else a /128 divisor."""
    if d_model <= max_tile:
        return d_model
    for t in range(max_tile, 0, -128):
        if d_model % t == 0:
            return t
    return d_model  # fallback: full width


def _embed_matmul_kernel(x_ref, w_ref, b_ref, o_ref):
    # x_ref: (tm, c_in)  w_ref: (c_in, tn)  b_ref: (1, tn)  o_ref: (tm, tn)
    acc = jnp.dot(x_ref[...], w_ref[...], preferred_element_type=jnp.float32)
    o_ref[...] = (acc + b_ref[...]).astype(o_ref.dtype)


def data_embedding_inverted(x, x_mark, weight, bias, *,
                            compute_dtype=jnp.bfloat16,
                            max_row_tile=512, max_col_tile=512):
    """
    x:      [B, L, N]
    x_mark: [B, L, M] or None
    weight: [d_model, c_in]  (PyTorch nn.Linear layout), c_in == L
    bias:   [d_model]
    returns [B, V, d_model] with V = N (+ M), dtype = x.dtype
    """
    B, L, N = x.shape
    d_model, c_in = weight.shape
    assert c_in == L, "nn.Linear in_features must equal seq_len L"
    out_dtype = x.dtype

    # Layout plumbing (fused by XLA into one pass, cast to bf16 in the same
    # pass): permute to [B, V, L] and flatten batch*variates into GEMM rows.
    x_perm = jnp.transpose(x, (0, 2, 1))                        # [B, N, L]
    if x_mark is not None:
        xm_perm = jnp.transpose(x_mark, (0, 2, 1)).astype(x.dtype)  # [B, M, L]
        x_perm = jnp.concatenate([x_perm, xm_perm], axis=1)     # [B, V, L]
    V = x_perm.shape[1]

    R = B * V
    Rp = _round_up(R, 8)
    x_flat = x_perm.reshape(R, c_in).astype(compute_dtype)
    if Rp != R:
        x_flat = jnp.pad(x_flat, ((0, Rp - R), (0, 0)))

    tm = _pick_row_tile(Rp, max_row_tile)
    tn = _pick_col_tile(d_model, max_col_tile)
    grid = (Rp // tm, d_model // tn)

    w_t = jnp.transpose(weight, (1, 0)).astype(compute_dtype)   # [c_in, d_model]
    b2d = bias.reshape(1, d_model).astype(jnp.float32)          # [1, d_model]

    # Explicit scoped-VMEM limit: double-buffered blocks + headroom, capped
    # well under v7x's 64 MiB physical VMEM, >= v5e's 16 MiB scoped default.
    itemsize = jnp.dtype(compute_dtype).itemsize
    out_itemsize = jnp.dtype(out_dtype).itemsize
    block_bytes = 2 * (tm * c_in * itemsize
                       + c_in * tn * itemsize
                       + tn * 4
                       + tm * tn * out_itemsize)
    vmem_limit = int(min(max(4 * block_bytes, 16 * 1024 * 1024),
                         48 * 1024 * 1024))

    cost = pl.CostEstimate(
        flops=2 * Rp * c_in * d_model,
        transcendentals=0,
        bytes_accessed=(Rp * c_in * itemsize
                        + c_in * d_model * itemsize
                        + d_model * 4
                        + Rp * d_model * out_itemsize),
    )

    out_flat = pl.pallas_call(
        _embed_matmul_kernel,
        out_shape=jax.ShapeDtypeStruct((Rp, d_model), out_dtype),
        grid=grid,
        in_specs=[
            pl.BlockSpec((tm, c_in), lambda i, j: (i, 0)),   # activations
            pl.BlockSpec((c_in, tn), lambda i, j: (0, j)),   # weight (resident per j)
            pl.BlockSpec((1, tn), lambda i, j: (0, j)),      # bias (f32)
        ],
        out_specs=pl.BlockSpec((tm, tn), lambda i, j: (i, j)),
        compiler_params=pltpu.CompilerParams(
            dimension_semantics=("parallel", "parallel"),
            vmem_limit_bytes=vmem_limit,
        ),
        cost_estimate=cost,
    )(x_flat, w_t, b2d)

    if Rp != R:
        out_flat = out_flat[:R]
    return out_flat.reshape(B, V, d_model)


if __name__ == "__main__":
    # Small shapes: batch=2, seq_len (c_in)=8, variates=4, time-marks=3, d_model=32
    B, L, N, M, d_model = 2, 8, 4, 3, 32
    c_in = L

    key = jax.random.PRNGKey(0)
    k_x, k_xm, k_w, k_b = jax.random.split(key, 4)

    x = jax.random.normal(k_x, (B, L, N), dtype=jnp.float32)
    x_mark = jax.random.normal(k_xm, (B, L, M), dtype=jnp.float32)

    # Deterministic nn.Linear(c_in, d_model) params (PyTorch layout).
    bound = 1.0 / (c_in ** 0.5)
    weight = jax.random.uniform(k_w, (d_model, c_in), jnp.float32, -bound, bound)
    bias = jax.random.uniform(k_b, (d_model,), jnp.float32, -bound, bound)

    # With x_mark.
    out = data_embedding_inverted(x, x_mark, weight, bias)
    out = jax.block_until_ready(out)

    x_perm = jnp.concatenate(
        [jnp.transpose(x, (0, 2, 1)), jnp.transpose(x_mark, (0, 2, 1))], axis=1
    )
    ref = jnp.einsum("bvl,dl->bvd", x_perm, weight) + bias
    assert out.shape == (B, N + M, d_model)
    # bf16 MXU operands with f32 accumulation -> loose tolerance vs f32 ref.
    assert jnp.allclose(out, ref, atol=5e-2, rtol=5e-2), (
        float(jnp.max(jnp.abs(out - ref))))

    # x_mark is None path.
    out2 = data_embedding_inverted(x, None, weight, bias)
    out2 = jax.block_until_ready(out2)
    ref2 = jnp.einsum("bvl,dl->bvd", jnp.transpose(x, (0, 2, 1)), weight) + bias
    assert out2.shape == (B, N, d_model)
    assert jnp.allclose(out2, ref2, atol=5e-2, rtol=5e-2), (
        float(jnp.max(jnp.abs(out2 - ref2))))

    print("KERNEL_OK")
</pallas_src>

<mosaic_0001>
module attributes {stable_mosaic.version = 11 : i64} {
  func.func @_embed_matmul_kernel(%arg0: i32, %arg1: i32, %arg2: memref<16x8xbf16, #tpu.memory_space<vmem>>, %arg3: memref<8x32xbf16, #tpu.memory_space<vmem>>, %arg4: memref<1x32xf32, #tpu.memory_space<vmem>>, %arg5: memref<16x32xf32, #tpu.memory_space<vmem>>) attributes {dimension_semantics = [#tpu.dimension_semantics<parallel>, #tpu.dimension_semantics<parallel>], iteration_bounds = array<i64: 1, 1>, scalar_prefetch = 0 : i64, scratch_operands = 0 : i64, tpu.core_type = #tpu.core_type<tc>, window_params = [{transform_indices = @transform_0, window_bounds = array<i64: 16, 8>}, {transform_indices = @transform_1, window_bounds = array<i64: 8, 32>}, {transform_indices = @transform_2, window_bounds = array<i64: 1, 32>}, {transform_indices = @transform_3, window_bounds = array<i64: 16, 32>}]} {
    %c0 = arith.constant 0 : index
    %c0_0 = arith.constant 0 : index
    %0 = vector.load %arg2[%c0, %c0_0] : memref<16x8xbf16, #tpu.memory_space<vmem>>, vector<16x8xbf16>
    %c0_1 = arith.constant 0 : index
    %c0_2 = arith.constant 0 : index
    %1 = vector.load %arg3[%c0_1, %c0_2] : memref<8x32xbf16, #tpu.memory_space<vmem>>, vector<8x32xbf16>
    %cst = arith.constant dense<0.000000e+00> : vector<16x32xf32>
    %2 = tpu.matmul %0, %1, %cst {dimension_numbers = #tpu.dot_dimension_numbers<[1], [0], [0], [1], [0, 0, 1, 1], [], []>} : vector<16x8xbf16>, vector<8x32xbf16>, vector<16x32xf32> -> vector<16x32xf32>
    %c0_3 = arith.constant 0 : index
    %c0_4 = arith.constant 0 : index
    %3 = vector.load %arg4[%c0_3, %c0_4] : memref<1x32xf32, #tpu.memory_space<vmem>>, vector<1x32xf32>
    %4 = vector.broadcast %3 : vector<1x32xf32> to vector<16x32xf32>
    %5 = arith.addf %2, %4 : vector<16x32xf32>
    %c0_5 = arith.constant 0 : index
    %c0_6 = arith.constant 0 : index
    %6 = vector.load %arg5[%c0_5, %c0_6] : memref<16x32xf32, #tpu.memory_space<vmem>>, vector<16x32xf32>
    tpu.vector_store %arg5[%c0_5, %c0_6], %5 {strides = array<i32>} : memref<16x32xf32, #tpu.memory_space<vmem>>, vector<16x32xf32>,
    return
  }
  func.func @transform_0(%arg0: i32, %arg1: i32) -> (i32, i32) {
    %c0_i32 = arith.constant 0 : i32
    %c0_i32_0 = arith.constant 0 : i32
    return %arg0, %c0_i32 : i32, i32
  }
  func.func @transform_1(%arg0: i32, %arg1: i32) -> (i32, i32) {
    %c0_i32 = arith.constant 0 : i32
    %c0_i32_0 = arith.constant 0 : i32
    return %c0_i32, %arg1 : i32, i32
  }
  func.func @transform_2(%arg0: i32, %arg1: i32) -> (i32, i32) {
    %c0_i32 = arith.constant 0 : i32
    %c0_i32_0 = arith.constant 0 : i32
    return %c0_i32, %arg1 : i32, i32
  }
  func.func @transform_3(%arg0: i32, %arg1: i32) -> (i32, i32) {
    %c0_i32 = arith.constant 0 : i32
    return %arg0, %arg1 : i32, i32
  }
}

</mosaic_0001>

<bundles_post_ra>
// kernel: tpu_custom_call.1
= control target key start
LH: loop header
LB: loop body
LE: loop exit
PB: predicated region body
PF: predicated region fallthrough
CT: control target
= control target key end

     0   :  { %vm35_vm0 = vcmask 1043456   ;;  %v140_v1 = vmov 0.0   ;;  %vm141_vm1 = vmmov 0   ;;  %vm31_vm2 = vcmask 64512   ;;  %s186_s0 = inlined_call_operand.vmem [shape: bf16[16,8], index: 0, kind: input, shape index: {}]   ;;  %s187_s1 = inlined_call_operand.vmem [shape: bf16[8,32], index: 1, kind: input, shape index: {}]   ;;  %s188_s2 = inlined_call_operand.vmem [shape: f32[1,32], index: 2, kind: input, shape index: {}]   ;;  %s189_s3 = inlined_call_operand.hbm [shape: f32[16,32], index: 3, kind: output, shape index: {}]  }
   0x1   :  { %v18_v0 = vld [vmem:[%s187_s1] sm:$0xf]  ;;  %104 = vmatprep.subr.bf16.mxu0 %v140_v1  ;;  %106 = vmatprep.mubr.msk.bf16.mxu0 %vm141_vm1, %v140_v1 }
   0x2   :  { %v37_v2 = vsel %vm35_vm0, %v18_v0, 0  ;;  %v115_v3 = vld [vmem:[%s186_s0] sm:$0xff]  }
   0x3   :  { %105 = vmatpush3.bf16.msra.mxu0 %v37_v2 }
   0x4   :  { %8 = vsyncpa [#allocation3], 0  ;;  %v99_v4 = vld [vmem:[%s188_s2] ss:$0 sm:$0xff]  ;;  %s142_s18 = smov [#allocation2]   ;;  %vm80_vm3 = vcmask 261120  }
   0x5   :  { %s88_s1 = sshll.u32 %s142_s18, 4  ;;  %s89_s1 = int_to_ptr.vmem [resolvable:$true] %s88_s1 }
   0x6   :  { %107 = vmatmul.mubr.msk.bf16.vlgmr.msra.gmra.mrb[0].mxu0 %vm31_vm2, %v115_v3  ;;  %s116_s0 = scalar_lea.vmem %s89_s1, 256  ;;  %p121_p1 = scmp.lt.s32.totalorder %s89_s1, %s89_s1 }
   0x7   :  { %p117_p0 = scmp.ne.s32.totalorder %s89_s1, %s116_s0  ;;  %p122_p2 = scmp.lt.s32.totalorder %s116_s0, %s116_s0 }
   0x9   :  { %p123_p3 = por %p122_p2, %p121_p1 }
   0xb   :  { %p124_p4 = pnand %p123_p3, %p117_p0 }
  0xd9   :  { %v73_v5 = vpop.f32.mrb[0].mxu0 }
  0xda   :  { %v74_v6 = vadd.f32 %v99_v4, %v73_v5  ;;  %v108_v7 = vpop.f32.mrb[1].mxu0 }
  0xdb   :  { %v76_v8 = vpop.f32.mrb[2].mxu0 }
  0xdc   :  { %81 = vst.msk [vmem:[#allocation2] sm:$0xff] %vm80_vm3, %v74_v6  ;;  %v77_v9 = vadd.f32 %v99_v4, %v76_v8  ;;  %v109_v10 = vpop.f32.mrb[3].mxu0 }
  0xde   :  { %82 = vst.msk [vmem:[#allocation2 + $0x8] sm:$0xff] %vm80_vm3, %v77_v9 }
  0xdf   :  { %127 = shalt.err (!%p124_p4)
}
  0xe0   :  { %s128_s20 = scalar_lea.hbm %s189_s3, 256 }
  0xe1   :  { %p129_p5 = scmp.ne.s32.totalorder %s189_s3, %s128_s20  ;;  %p132_p6 = scmp.lt.u32.totalorder %s128_s20, %s189_s3 }
  0xe3   :  { %p134_p7 = pnand %p132_p6, %p129_p5 }
  0xe5   :  { %137 = shalt.err (!%p134_p7)
}
  0xe6   :  { %s143_s25 = smov 128   ;;  %s144_s26 = smov 8  }
  0xe7   :  { %94 = dma.vmem_to_hbm [thread:$0]  %s89_s1, 256, %s189_s3, [#allocation3], %s143_s25, %s143_s25, %s144_s26  }
  0xe8   :  { %138 = dma.done.wait [#allocation3], 256  }
  0xe9   :  { %139 = vsyncadd [#allocation3], 4294967040 }
  0xea   :  { %98 = vsyncpa [#allocation3], 1 }

</bundles_post_ra>
